<compile_context>
chip_gen: v6e
topology: v6e:2x2x1
jax: 0.10.0
libtpu: 0.0.40
codegen_flags: <defaults>
</compile_context>

<pallas_src>
import jax
import jax.numpy as jnp
from jax.experimental import pallas as pl
from jax.experimental.pallas import tpu as pltpu


_VMEM_BUDGET = 40 << 20  # keep per-step tiles comfortably inside v7x's 64 MiB


def _cdiv(a, b):
    return -(-a // b)


def _round_up(x, m):
    return _cdiv(x, m) * m


def _select_tb(n, C, Lp, out_sz):
    """Batch rows per grid step: VMEM-aware cap, padding-minimizing size."""
    # Resident, single-buffered operands: W1.T (bf16) + b1 row (f32).
    resident = Lp * Lp * 2 + Lp * 4
    # Per batch-row bytes: x tile (bf16, double-buffered, full Lp) +
    # output tile (double-buffered) + in-kernel f32 temps (z, xf, d, acc),
    # conservatively sized at full Lp columns.
    per_row = C * Lp * (2 * 2 + 2 * out_sz + 4 * 4)
    avail = max(_VMEM_BUDGET - resident - (2 << 20), 16 * per_row)
    cap = max(16, min(256, (avail // per_row) // 16 * 16))
    steps = _cdiv(n, cap)                     # fewest batch tiles ...
    tb = _round_up(_cdiv(n, steps), 16)       # ... sized to minimize padding
    return tb, steps * tb


def _select_tn(Lp, batch_tiles):
    """Node-column tile: largest multiple of 128 dividing Lp, capped so output
    tiles stay modest and, when the batch axis has a single tile, so the grid
    has >= 2 steps (work for both v7x TensorCores / pipeline overlap)."""
    cap = min(Lp, 512)
    if batch_tiles < 2 and Lp >= 256:
        cap = min(cap, Lp // 2)
    tn = 128
    t = 256
    while t <= cap:
        if Lp % t == 0:
            tn = t
        t += 128
    return tn


def _vmem_limit(C, TB, Lp, TN, out_sz):
    resident = Lp * Lp * 2 + Lp * 4              # W1.T + b1 (single-buffered)
    streamed = 2 * C * TB * Lp * 2               # x (bf16, double-buffered)
    streamed += 2 * C * TB * TN * out_sz         # out (double-buffered)
    temps = 4 * C * TB * TN * 4                  # z, xf, d, acc (f32)
    need = resident + streamed + temps
    return int(min(60 << 20, max(int(need * 1.4) + (2 << 20), 20 << 20)))


def gcn_kernel(x_ref, w1t_ref, b1_ref, w2_ref, o_ref):
    # x_ref  : (C, TB, Lp) bf16   state-major batch tile (resident across cols)
    # w1t_ref: (Lp, Lp)    bf16   W1.T, resident, single-buffered
    # b1_ref : (1, Lp)     f32    conv1 bias (node dim), resident
    # w2_ref : (C, C)      f32    conv2 weight, SMEM scalars
    # o_ref  : (C, TB, TN)        output column tile
    C, TB, Lp = x_ref.shape
    TN = o_ref.shape[-1]
    col = pl.multiple_of(pl.program_id(1) * TN, 128)

    # One batched, weight-resident MXU pass over all C states:
    #   Z = reshape(x, (C*TB, Lp)) @ W1.T[:, col:col+TN]   (bf16 in, f32 acc)
    z = jnp.dot(
        x_ref[...].reshape(C * TB, Lp),
        w1t_ref[:, pl.ds(col, TN)],
        preferred_element_type=jnp.float32,
    ).reshape(C, TB, TN)

    # h2 = conv1(x) - x in f32; the bf16->f32 cast of x happens exactly once.
    xf = x_ref[:, :, pl.ds(col, TN)].astype(jnp.float32)     # (C, TB, TN)
    b1 = b1_ref[:, pl.ds(col, TN)]                            # (1, TN)
    d = z - xf + b1[None, :, :]                               # (C, TB, TN) f32

    # conv2: tiny C-way state mix on the VPU (W2 scalars from SMEM) + ReLU.
    # TODO(synk): for C >= ~Lp/64 move this mix onto the MXU as a
    # (C, C) x (C, TB*TN) matmul instead of the unrolled scalar*vector form.
    for i in range(C):
        acc = w2_ref[i, 0] * d[0]
        for s in range(1, C):
            acc = acc + w2_ref[i, s] * d[s]
        o_ref[i] = jnp.maximum(acc, 0.0).astype(o_ref.dtype)


def gcn_forward(x_nchw, w1, b1, w2, *, out_dtype=jnp.float32):
    """x_nchw: (n, C, H, W); w1: (L, L); b1: (L,); w2: (C, C).

    out_dtype=jnp.bfloat16 halves the HBM writeback (kernel is HBM-bound at
    small L) at a small accuracy cost; default stays f32.
    """
    n, C, H, W = x_nchw.shape
    L = H * W
    Lp = _round_up(L, 128)                               # lane-dense node dim
    out_sz = jnp.dtype(out_dtype).itemsize

    TB, n_pad = _select_tb(n, C, Lp, out_sz)
    bt = n_pad // TB
    TN = _select_tn(Lp, bt)
    ct = Lp // TN

    # Layout plumbing (plain JAX, fused by XLA): pad, go state-major, cast bf16.
    x = jnp.asarray(x_nchw, jnp.float32).reshape(n, C, L)
    x = jnp.pad(x, ((0, n_pad - n), (0, 0), (0, Lp - L)))
    x_t = x.transpose(1, 0, 2).astype(jnp.bfloat16)                  # (C, n_pad, Lp)

    w1t = jnp.pad(jnp.asarray(w1, jnp.float32).T,
                  ((0, Lp - L), (0, Lp - L))).astype(jnp.bfloat16)   # (Lp, Lp)
    b1_row = jnp.pad(jnp.asarray(b1, jnp.float32), (0, Lp - L)).reshape(1, Lp)
    w2f = jnp.asarray(w2, jnp.float32)                               # (C, C)

    # Single-buffer the resident operands (constant index_map -> no re-DMA).
    resident_kwargs = {}
    if hasattr(pl, "Buffered"):
        resident_kwargs["pipeline_mode"] = pl.Buffered(1)

    out_t = pl.pallas_call(
        gcn_kernel,
        out_shape=jax.ShapeDtypeStruct((C, n_pad, Lp), out_dtype),
        grid_spec=pltpu.PrefetchScalarGridSpec(
            num_scalar_prefetch=0,
            grid=(bt, ct),                                  # batch tiles, col tiles
            in_specs=[
                pl.BlockSpec((C, TB, Lp), lambda t, j: (0, t, 0)),   # x tile
                pl.BlockSpec((Lp, Lp), lambda t, j: (0, 0),
                             **resident_kwargs),                     # W1.T
                pl.BlockSpec((1, Lp), lambda t, j: (0, 0),
                             **resident_kwargs),                     # b1
                pl.BlockSpec(memory_space=pltpu.MemorySpace.SMEM),   # W2 scalars
            ],
            out_specs=pl.BlockSpec((C, TB, TN), lambda t, j: (0, t, j)),
        ),
        compiler_params=pltpu.CompilerParams(
            dimension_semantics=("parallel", "parallel"),
            vmem_limit_bytes=_vmem_limit(C, TB, Lp, TN, out_sz)),
    )(x_t, w1t, b1_row, w2f)

    out = out_t[:, :n, :L].transpose(1, 0, 2)                        # (n, C, L)
    return out.reshape(n, C, H, W)


def gcn_reference(x_nchw, w1, b1, w2):
    """Pure-JAX f32 reference matching the PyTorch forward."""
    n, C, H, W = x_nchw.shape
    L = H * W
    x = x_nchw.reshape(n, C, L).astype(jnp.float32)
    h1 = jnp.einsum("bsl,il->bsi", x, w1) + b1[None, None, :]
    h2 = h1 - x
    out = jnp.einsum("is,bsl->bil", w2, h2)
    out = jnp.maximum(out, 0.0)
    return out.reshape(n, C, H, W)


if __name__ == "__main__":
    # Small shapes consistent with the module: num_state = C, num_node = H*W.
    n, C, H, W = 2, 4, 16, 16
    L = H * W

    key = jax.random.PRNGKey(0)
    kx, k1, kb, k2 = jax.random.split(key, 4)

    x = jax.random.normal(kx, (n, C, H, W), dtype=jnp.float32)
    # Deterministic synthetic parameters (Conv1d k=1 weights squeezed to 2-D).
    w1 = jax.random.normal(k1, (L, L), dtype=jnp.float32) * (1.0 / L)   # conv1 weight
    b1 = jax.random.normal(kb, (L,), dtype=jnp.float32) * 0.1           # conv1 bias
    w2 = jax.random.normal(k2, (C, C), dtype=jnp.float32) * (1.0 / C)   # conv2 weight (bias=False)

    gcn_jit = jax.jit(gcn_forward)
    out = jax.block_until_ready(gcn_jit(x, w1, b1, w2))

    ref = gcn_reference(x, w1, b1, w2)
    assert out.shape == (n, C, H, W)
    # Only quantization vs the f32 reference is the bf16 cast of the streamed
    # matmul operands (f32 accumulation); observed error is ~1e-3 absolute.
    assert jnp.allclose(out, ref, atol=1e-2, rtol=1e-2), "mismatch vs reference"

    print("KERNEL_OK")
</pallas_src>

<mosaic_0001>
module attributes {stable_mosaic.version = 11 : i64} {
  func.func @gcn_kernel(%arg0: i32, %arg1: i32, %arg2: memref<4x16x256xbf16, #tpu.memory_space<vmem>>, %arg3: memref<256x256xbf16, #tpu.memory_space<vmem>>, %arg4: memref<1x256xf32, #tpu.memory_space<vmem>>, %arg5: memref<4x4xf32, #tpu.memory_space<smem>>, %arg6: memref<4x16x128xf32, #tpu.memory_space<vmem>>) attributes {dimension_semantics = [#tpu.dimension_semantics<parallel>, #tpu.dimension_semantics<parallel>], iteration_bounds = array<i64: 1, 2>, scalar_prefetch = 0 : i64, scratch_operands = 0 : i64, tpu.core_type = #tpu.core_type<tc>, window_params = [{transform_indices = @transform_0, window_bounds = array<i64: 4, 16, 256>}, {pipeline_mode = #tpu.pipeline_mode<synchronous>, transform_indices = @transform_1, window_bounds = array<i64: 256, 256>}, {pipeline_mode = #tpu.pipeline_mode<synchronous>, transform_indices = @transform_2, window_bounds = array<i64: 1, 256>}, {transform_indices = @transform_3, window_bounds = array<i64: 4, 4>}, {transform_indices = @transform_4, window_bounds = array<i64: 4, 16, 128>}]} {
    %c128_i32 = arith.constant 128 : i32
    %0 = arith.muli %arg1, %c128_i32 : i32
    %1 = tpu.assume_multiple %0, 128 : i32
    %c0 = arith.constant 0 : index
    %c0_0 = arith.constant 0 : index
    %c0_1 = arith.constant 0 : index
    %2 = vector.load %arg2[%c0, %c0_0, %c0_1] : memref<4x16x256xbf16, #tpu.memory_space<vmem>>, vector<4x16x256xbf16>
    %3 = vector.shape_cast %2 : vector<4x16x256xbf16> to vector<64x256xbf16>
    %c0_2 = arith.constant 0 : index
    %4 = arith.index_cast %1 : i32 to index
    %5 = vector.load %arg3[%c0_2, %4] : memref<256x256xbf16, #tpu.memory_space<vmem>>, vector<256x128xbf16>
    %cst = arith.constant dense<0.000000e+00> : vector<64x128xf32>
    %6 = tpu.matmul %3, %5, %cst {dimension_numbers = #tpu.dot_dimension_numbers<[1], [0], [0], [1], [0, 0, 1, 1], [], []>} : vector<64x256xbf16>, vector<256x128xbf16>, vector<64x128xf32> -> vector<64x128xf32>
    %7 = vector.shape_cast %6 : vector<64x128xf32> to vector<4x16x128xf32>
    %c0_3 = arith.constant 0 : index
    %c0_4 = arith.constant 0 : index
    %8 = arith.index_cast %1 : i32 to index
    %9 = vector.load %arg2[%c0_3, %c0_4, %8] : memref<4x16x256xbf16, #tpu.memory_space<vmem>>, vector<4x16x128xbf16>
    %10 = arith.extf %9 : vector<4x16x128xbf16> to vector<4x16x128xf32>
    %c0_5 = arith.constant 0 : index
    %11 = arith.index_cast %1 : i32 to index
    %12 = vector.load %arg4[%c0_5, %11] : memref<1x256xf32, #tpu.memory_space<vmem>>, vector<1x128xf32>
    %13 = arith.subf %7, %10 : vector<4x16x128xf32>
    %14 = vector.shape_cast %12 : vector<1x128xf32> to vector<1x1x128xf32>
    %15 = vector.broadcast %14 : vector<1x1x128xf32> to vector<4x16x128xf32>
    %16 = arith.addf %13, %15 : vector<4x16x128xf32>
    %c0_6 = arith.constant 0 : index
    %c0_7 = arith.constant 0 : index
    %17 = memref.load %arg5[%c0_6, %c0_7] : memref<4x4xf32, #tpu.memory_space<smem>>
    %18 = vector.extract_strided_slice %16 {offsets = [0, 0, 0], sizes = [1, 16, 128], strides = [1, 1, 1]} : vector<4x16x128xf32> to vector<1x16x128xf32>
    %19 = vector.shape_cast %18 : vector<1x16x128xf32> to vector<16x128xf32>
    %20 = vector.broadcast %17 : f32 to vector<16x128xf32>
    %21 = arith.mulf %20, %19 : vector<16x128xf32>
    %c0_8 = arith.constant 0 : index
    %c1 = arith.constant 1 : index
    %22 = memref.load %arg5[%c0_8, %c1] : memref<4x4xf32, #tpu.memory_space<smem>>
    %23 = vector.extract_strided_slice %16 {offsets = [1, 0, 0], sizes = [1, 16, 128], strides = [1, 1, 1]} : vector<4x16x128xf32> to vector<1x16x128xf32>
    %24 = vector.shape_cast %23 : vector<1x16x128xf32> to vector<16x128xf32>
    %25 = vector.broadcast %22 : f32 to vector<16x128xf32>
    %26 = arith.mulf %25, %24 : vector<16x128xf32>
    %27 = arith.addf %21, %26 : vector<16x128xf32>
    %c0_9 = arith.constant 0 : index
    %c2 = arith.constant 2 : index
    %28 = memref.load %arg5[%c0_9, %c2] : memref<4x4xf32, #tpu.memory_space<smem>>
    %29 = vector.extract_strided_slice %16 {offsets = [2, 0, 0], sizes = [1, 16, 128], strides = [1, 1, 1]} : vector<4x16x128xf32> to vector<1x16x128xf32>
    %30 = vector.shape_cast %29 : vector<1x16x128xf32> to vector<16x128xf32>
    %31 = vector.broadcast %28 : f32 to vector<16x128xf32>
    %32 = arith.mulf %31, %30 : vector<16x128xf32>
    %33 = arith.addf %27, %32 : vector<16x128xf32>
    %c0_10 = arith.constant 0 : index
    %c3 = arith.constant 3 : index
    %34 = memref.load %arg5[%c0_10, %c3] : memref<4x4xf32, #tpu.memory_space<smem>>
    %35 = vector.extract_strided_slice %16 {offsets = [3, 0, 0], sizes = [1, 16, 128], strides = [1, 1, 1]} : vector<4x16x128xf32> to vector<1x16x128xf32>
    %36 = vector.shape_cast %35 : vector<1x16x128xf32> to vector<16x128xf32>
    %37 = vector.broadcast %34 : f32 to vector<16x128xf32>
    %38 = arith.mulf %37, %36 : vector<16x128xf32>
    %39 = arith.addf %33, %38 : vector<16x128xf32>
    %cst_11 = arith.constant 0.000000e+00 : f32
    %40 = vector.broadcast %cst_11 : f32 to vector<16x128xf32>
    %41 = arith.maximumf %39, %40 : vector<16x128xf32>
    %c0_12 = arith.constant 0 : index
    %c0_13 = arith.constant 0 : index
    %c0_14 = arith.constant 0 : index
    %42 = vector.load %arg6[%c0_12, %c0_13, %c0_14] : memref<4x16x128xf32, #tpu.memory_space<vmem>>, vector<1x16x128xf32>
    %43 = vector.shape_cast %42 : vector<1x16x128xf32> to vector<16x128xf32>
    %44 = vector.shape_cast %41 : vector<16x128xf32> to vector<1x16x128xf32>
    tpu.vector_store %arg6[%c0_12, %c0_13, %c0_14], %44 {strides = array<i32>} : memref<4x16x128xf32, #tpu.memory_space<vmem>>, vector<1x16x128xf32>,
    %c1_15 = arith.constant 1 : index
    %c0_16 = arith.constant 0 : index
    %45 = memref.load %arg5[%c1_15, %c0_16] : memref<4x4xf32, #tpu.memory_space<smem>>
    %46 = vector.extract_strided_slice %16 {offsets = [0, 0, 0], sizes = [1, 16, 128], strides = [1, 1, 1]} : vector<4x16x128xf32> to vector<1x16x128xf32>
    %47 = vector.shape_cast %46 : vector<1x16x128xf32> to vector<16x128xf32>
    %48 = vector.broadcast %45 : f32 to vector<16x128xf32>
    %49 = arith.mulf %48, %47 : vector<16x128xf32>
    %c1_17 = arith.constant 1 : index
    %c1_18 = arith.constant 1 : index
    %50 = memref.load %arg5[%c1_17, %c1_18] : memref<4x4xf32, #tpu.memory_space<smem>>
    %51 = vector.extract_strided_slice %16 {offsets = [1, 0, 0], sizes = [1, 16, 128], strides = [1, 1, 1]} : vector<4x16x128xf32> to vector<1x16x128xf32>
    %52 = vector.shape_cast %51 : vector<1x16x128xf32> to vector<16x128xf32>
    %53 = vector.broadcast %50 : f32 to vector<16x128xf32>
    %54 = arith.mulf %53, %52 : vector<16x128xf32>
    %55 = arith.addf %49, %54 : vector<16x128xf32>
    %c1_19 = arith.constant 1 : index
    %c2_20 = arith.constant 2 : index
    %56 = memref.load %arg5[%c1_19, %c2_20] : memref<4x4xf32, #tpu.memory_space<smem>>
    %57 = vector.extract_strided_slice %16 {offsets = [2, 0, 0], sizes = [1, 16, 128], strides = [1, 1, 1]} : vector<4x16x128xf32> to vector<1x16x128xf32>
    %58 = vector.shape_cast %57 : vector<1x16x128xf32> to vector<16x128xf32>
    %59 = vector.broadcast %56 : f32 to vector<16x128xf32>
    %60 = arith.mulf %59, %58 : vector<16x128xf32>
    %61 = arith.addf %55, %60 : vector<16x128xf32>
    %c1_21 = arith.constant 1 : index
    %c3_22 = arith.constant 3 : index
    %62 = memref.load %arg5[%c1_21, %c3_22] : memref<4x4xf32, #tpu.memory_space<smem>>
    %63 = vector.extract_strided_slice %16 {offsets = [3, 0, 0], sizes = [1, 16, 128], strides = [1, 1, 1]} : vector<4x16x128xf32> to vector<1x16x128xf32>
    %64 = vector.shape_cast %63 : vector<1x16x128xf32> to vector<16x128xf32>
    %65 = vector.broadcast %62 : f32 to vector<16x128xf32>
    %66 = arith.mulf %65, %64 : vector<16x128xf32>
    %67 = arith.addf %61, %66 : vector<16x128xf32>
    %cst_23 = arith.constant 0.000000e+00 : f32
    %68 = vector.broadcast %cst_23 : f32 to vector<16x128xf32>
    %69 = arith.maximumf %67, %68 : vector<16x128xf32>
    %c1_24 = arith.constant 1 : index
    %c0_25 = arith.constant 0 : index
    %c0_26 = arith.constant 0 : index
    %70 = vector.load %arg6[%c1_24, %c0_25, %c0_26] : memref<4x16x128xf32, #tpu.memory_space<vmem>>, vector<1x16x128xf32>
    %71 = vector.shape_cast %70 : vector<1x16x128xf32> to vector<16x128xf32>
    %72 = vector.shape_cast %69 : vector<16x128xf32> to vector<1x16x128xf32>
    tpu.vector_store %arg6[%c1_24, %c0_25, %c0_26], %72 {strides = array<i32>} : memref<4x16x128xf32, #tpu.memory_space<vmem>>, vector<1x16x128xf32>,
    %c2_27 = arith.constant 2 : index
    %c0_28 = arith.constant 0 : index
    %73 = memref.load %arg5[%c2_27, %c0_28] : memref<4x4xf32, #tpu.memory_space<smem>>
    %74 = vector.extract_strided_slice %16 {offsets = [0, 0, 0], sizes = [1, 16, 128], strides = [1, 1, 1]} : vector<4x16x128xf32> to vector<1x16x128xf32>
    %75 = vector.shape_cast %74 : vector<1x16x128xf32> to vector<16x128xf32>
    %76 = vector.broadcast %73 : f32 to vector<16x128xf32>
    %77 = arith.mulf %76, %75 : vector<16x128xf32>
    %c2_29 = arith.constant 2 : index
    %c1_30 = arith.constant 1 : index
    %78 = memref.load %arg5[%c2_29, %c1_30] : memref<4x4xf32, #tpu.memory_space<smem>>
    %79 = vector.extract_strided_slice %16 {offsets = [1, 0, 0], sizes = [1, 16, 128], strides = [1, 1, 1]} : vector<4x16x128xf32> to vector<1x16x128xf32>
    %80 = vector.shape_cast %79 : vector<1x16x128xf32> to vector<16x128xf32>
    %81 = vector.broadcast %78 : f32 to vector<16x128xf32>
    %82 = arith.mulf %81, %80 : vector<16x128xf32>
    %83 = arith.addf %77, %82 : vector<16x128xf32>
    %c2_31 = arith.constant 2 : index
    %c2_32 = arith.constant 2 : index
    %84 = memref.load %arg5[%c2_31, %c2_32] : memref<4x4xf32, #tpu.memory_space<smem>>
    %85 = vector.extract_strided_slice %16 {offsets = [2, 0, 0], sizes = [1, 16, 128], strides = [1, 1, 1]} : vector<4x16x128xf32> to vector<1x16x128xf32>
    %86 = vector.shape_cast %85 : vector<1x16x128xf32> to vector<16x128xf32>
    %87 = vector.broadcast %84 : f32 to vector<16x128xf32>
    %88 = arith.mulf %87, %86 : vector<16x128xf32>
    %89 = arith.addf %83, %88 : vector<16x128xf32>
    %c2_33 = arith.constant 2 : index
    %c3_34 = arith.constant 3 : index
    %90 = memref.load %arg5[%c2_33, %c3_34] : memref<4x4xf32, #tpu.memory_space<smem>>
    %91 = vector.extract_strided_slice %16 {offsets = [3, 0, 0], sizes = [1, 16, 128], strides = [1, 1, 1]} : vector<4x16x128xf32> to vector<1x16x128xf32>
    %92 = vector.shape_cast %91 : vector<1x16x128xf32> to vector<16x128xf32>
    %93 = vector.broadcast %90 : f32 to vector<16x128xf32>
    %94 = arith.mulf %93, %92 : vector<16x128xf32>
    %95 = arith.addf %89, %94 : vector<16x128xf32>
    %cst_35 = arith.constant 0.000000e+00 : f32
    %96 = vector.broadcast %cst_35 : f32 to vector<16x128xf32>
    %97 = arith.maximumf %95, %96 : vector<16x128xf32>
    %c2_36 = arith.constant 2 : index
    %c0_37 = arith.constant 0 : index
    %c0_38 = arith.constant 0 : index
    %98 = vector.load %arg6[%c2_36, %c0_37, %c0_38] : memref<4x16x128xf32, #tpu.memory_space<vmem>>, vector<1x16x128xf32>
    %99 = vector.shape_cast %98 : vector<1x16x128xf32> to vector<16x128xf32>
    %100 = vector.shape_cast %97 : vector<16x128xf32> to vector<1x16x128xf32>
    tpu.vector_store %arg6[%c2_36, %c0_37, %c0_38], %100 {strides = array<i32>} : memref<4x16x128xf32, #tpu.memory_space<vmem>>, vector<1x16x128xf32>,
    %c3_39 = arith.constant 3 : index
    %c0_40 = arith.constant 0 : index
    %101 = memref.load %arg5[%c3_39, %c0_40] : memref<4x4xf32, #tpu.memory_space<smem>>
    %102 = vector.extract_strided_slice %16 {offsets = [0, 0, 0], sizes = [1, 16, 128], strides = [1, 1, 1]} : vector<4x16x128xf32> to vector<1x16x128xf32>
    %103 = vector.shape_cast %102 : vector<1x16x128xf32> to vector<16x128xf32>
    %104 = vector.broadcast %101 : f32 to vector<16x128xf32>
    %105 = arith.mulf %104, %103 : vector<16x128xf32>
    %c3_41 = arith.constant 3 : index
    %c1_42 = arith.constant 1 : index
    %106 = memref.load %arg5[%c3_41, %c1_42] : memref<4x4xf32, #tpu.memory_space<smem>>
    %107 = vector.extract_strided_slice %16 {offsets = [1, 0, 0], sizes = [1, 16, 128], strides = [1, 1, 1]} : vector<4x16x128xf32> to vector<1x16x128xf32>
    %108 = vector.shape_cast %107 : vector<1x16x128xf32> to vector<16x128xf32>
    %109 = vector.broadcast %106 : f32 to vector<16x128xf32>
    %110 = arith.mulf %109, %108 : vector<16x128xf32>
    %111 = arith.addf %105, %110 : vector<16x128xf32>
    %c3_43 = arith.constant 3 : index
    %c2_44 = arith.constant 2 : index
    %112 = memref.load %arg5[%c3_43, %c2_44] : memref<4x4xf32, #tpu.memory_space<smem>>
    %113 = vector.extract_strided_slice %16 {offsets = [2, 0, 0], sizes = [1, 16, 128], strides = [1, 1, 1]} : vector<4x16x128xf32> to vector<1x16x128xf32>
    %114 = vector.shape_cast %113 : vector<1x16x128xf32> to vector<16x128xf32>
    %115 = vector.broadcast %112 : f32 to vector<16x128xf32>
    %116 = arith.mulf %115, %114 : vector<16x128xf32>
    %117 = arith.addf %111, %116 : vector<16x128xf32>
    %c3_45 = arith.constant 3 : index
    %c3_46 = arith.constant 3 : index
    %118 = memref.load %arg5[%c3_45, %c3_46] : memref<4x4xf32, #tpu.memory_space<smem>>
    %119 = vector.extract_strided_slice %16 {offsets = [3, 0, 0], sizes = [1, 16, 128], strides = [1, 1, 1]} : vector<4x16x128xf32> to vector<1x16x128xf32>
    %120 = vector.shape_cast %119 : vector<1x16x128xf32> to vector<16x128xf32>
    %121 = vector.broadcast %118 : f32 to vector<16x128xf32>
    %122 = arith.mulf %121, %120 : vector<16x128xf32>
    %123 = arith.addf %117, %122 : vector<16x128xf32>
    %cst_47 = arith.constant 0.000000e+00 : f32
    %124 = vector.broadcast %cst_47 : f32 to vector<16x128xf32>
    %125 = arith.maximumf %123, %124 : vector<16x128xf32>
    %c3_48 = arith.constant 3 : index
    %c0_49 = arith.constant 0 : index
    %c0_50 = arith.constant 0 : index
    %126 = vector.load %arg6[%c3_48, %c0_49, %c0_50] : memref<4x16x128xf32, #tpu.memory_space<vmem>>, vector<1x16x128xf32>
    %127 = vector.shape_cast %126 : vector<1x16x128xf32> to vector<16x128xf32>
    %128 = vector.shape_cast %125 : vector<16x128xf32> to vector<1x16x128xf32>
    tpu.vector_store %arg6[%c3_48, %c0_49, %c0_50], %128 {strides = array<i32>} : memref<4x16x128xf32, #tpu.memory_space<vmem>>, vector<1x16x128xf32>,
    return
  }
  func.func @transform_0(%arg0: i32, %arg1: i32) -> (i32, i32, i32) {
    %c0_i32 = arith.constant 0 : i32
    %c0_i32_0 = arith.constant 0 : i32
    %c0_i32_1 = arith.constant 0 : i32
    return %c0_i32, %arg0, %c0_i32_0 : i32, i32, i32
  }
  func.func @transform_1(%arg0: i32, %arg1: i32) -> (i32, i32) {
    %c0_i32 = arith.constant 0 : i32
    %c0_i32_0 = arith.constant 0 : i32
    %c0_i32_1 = arith.constant 0 : i32
    return %c0_i32, %c0_i32_0 : i32, i32
  }
  func.func @transform_2(%arg0: i32, %arg1: i32) -> (i32, i32) {
    %c0_i32 = arith.constant 0 : i32
    %c0_i32_0 = arith.constant 0 : i32
    %c0_i32_1 = arith.constant 0 : i32
    return %c0_i32, %c0_i32_0 : i32, i32
  }
  func.func @transform_3(%arg0: i32, %arg1: i32) -> (i32, i32) {
    %c0_i32 = arith.constant 0 : i32
    %c0_i32_0 = arith.constant 0 : i32
    %c0_i32_1 = arith.constant 0 : i32
    return %c0_i32, %c0_i32_0 : i32, i32
  }
  func.func @transform_4(%arg0: i32, %arg1: i32) -> (i32, i32, i32) {
    %c0_i32 = arith.constant 0 : i32
    %c0_i32_0 = arith.constant 0 : i32
    return %c0_i32, %arg0, %arg1 : i32, i32, i32
  }
}

</mosaic_0001>

<bundles_post_ra>
// kernel: gcn_forward.1
= control target key start
LH: loop header
LB: loop body
LE: loop exit
PB: predicated region body
PF: predicated region fallthrough
CT: control target
= control target key end

     0   :  { %s1333_s0 = inlined_call_operand.vmem [shape: bf16[4,16,256], index: 0, kind: input, shape index: {}]   ;;  %s1334_s1 = inlined_call_operand.vmem [shape: bf16[256,256], index: 1, kind: input, shape index: {}]   ;;  %s1335_s2 = inlined_call_operand.vmem [shape: f32[1,256], index: 2, kind: input, shape index: {}]   ;;  %s1336_s3 = inlined_call_operand.vmem [shape: f32[4,4], index: 3, kind: input, shape index: {}]   ;;  %s1337_s4 = inlined_call_operand.vmem [shape: f32[4,16,256], index: 4, kind: output, shape index: {}]  }
   0x1   :  { %1338 = sst [smem:[#allocation6_spill]] %s1333_s0 }
   0x2   :  { %1339 = sst [smem:[#allocation7_spill]] %s1334_s1 }
   0x3   :  { %9 = vsyncpa [#allocation3], 0  ;;  %s1057_s15 = smov 0   ;;  %s1059_s16 = smov 0  }
   0x4   :  { %s1061_s17 = smov 0   ;;  %s1063_s18 = smov 0  }
   0x5   :  { %s1065_s19 = smov 0  }
   0x6 LB: > { %s776_s20 = sadd.s32 4294967295, %s1029_s19   ;;  %s24_s21 = sadd.s32 1, %s1025_s18  ;;  %s1029_s19 = sphi %s1065_s19, %s15_s19   ;;  %s1025_s18 = sphi %s1063_s18, %s1348_s18   ;;  %s1021_s17 = sphi %s1061_s17, %s1347_s17   ;;  %s1017_s16 = sphi %s1059_s16, %s1346_s16   ;;  %s1013_s15 = sphi %s1057_s15, %s1345_s15  }
   0x7   : > { %p25_p0 = scmp.ge.s32.totalorder %s24_s21, 2  ;;  %s125_s22 = sadd.s32 1, %s1017_s16 }
   0x8   : > { %p135_p1 = scmp.ne.s32.totalorder %s1017_s16, %s1013_s15  ;;  %p136_p2 = scmp.eq.s32.totalorder %s776_s20, 1 }
   0x9   : > { %s1350_s21 = smov (%p25_p0, %s24_s21), 0  ;;  %p778_p4 = scmp.ge.s32.totalorder %s1029_s19, 1 }
   0xa   : > { %p1089_p3 = por %p136_p2, %p135_p1  ;;  %s121_s24 = ssub.s32 %s1025_s18, %s1350_s21 }
   0xb   : > { %p149_p5 = scmp.lt.s32.totalorder %s1029_s19, 3  ;;  %p123_p6 = scmp.eq.s32.totalorder %s121_s24, 0 }
   0xc   : > { %p1101_p8 = scmp.eq.s32.totalorder %s776_s20, 0  ;;  %s178_s30 = sshll.u32 %s1336_s3, 4  ;;  %s179_s30 = int_to_ptr.vmem [resolvable:$true] %s178_s30 }
   0xd   : > { %p1097_p7 = pnand %p778_p4, %p149_p5  ;;  %s972_s5 = scalar_lea.vmem %s179_s30, 64 }
   0xe   : > { %s1106_s27 = scalar_select %p123_p6, %s1017_s16, %s125_s22  }
   0xf   : > { %p897_p9 = pneg %p1097_p7  ;;  %p973_p11 = scmp.ne.s32.totalorder %s179_s30, %s972_s5 }
  0x10   : > { %p980_p1 = scmp.lt.s32.totalorder %s179_s30, %s179_s30  ;;  %p981_p2 = scmp.lt.s32.totalorder %s972_s5, %s972_s5 }
  0x11   : > { %p898_p10 = pnand %p1101_p8, %p897_p9 }
  0x12   : > { %p982_p4 = por %p981_p2, %p980_p1 }
  0x13   : > { %p974_p12 = pneg %p898_p10 }
  0x15   : > { %p975_p13 = pnand %p974_p12, %p973_p11 }
  0x17   : > { %p976_p0 = pneg %p975_p13 }
  0x19   : > { %p983_p5 = pnand %p982_p4, %p976_p0 }
  0x1b   : > { %986 = shalt.err (!%p983_p5)
}
  0x1c   : > { %s1031_s6 = smov [#allocation2]   ;;  %191 = sbr.rel (%p1097_p7) target bundleno = 313 (0x139), region = 36 }
  0x1d   : > { %900 = dma.vmem_to_smem (!%p898_p10), %s179_s30, 64, %s1031_s6, [#allocation3]  }
  0x21   : > { %1008 = dma.done.wait (%p1101_p8), [#allocation3], 64  }
  0x22   : > { %1010 = vsyncadd (%p1101_p8), [#allocation3], 4294967232 }
  0x23   : > { %197 = sfence }
  0x24   : > { %s784_s7 = sshll.u32 %s1021_s17, 7  ;;  %s1343_s0 = sld [smem:[#allocation6_spill]] }
  0x25   : > { %s1122_s8 = sshra.s32 %s784_s7, 7  ;;  %s1344_s1 = sld [smem:[#allocation7_spill]] }
  0x26   : > { %s785_s11 = sshll.u32 %s1122_s8, 2  ;;  %s1172_s13 = sld [smem:[#allocation2]] }
  0x27   : > { %s1174_s14 = sld [smem:[#allocation2 + $0x80]]  ;;  %s491_s26 = scalar_lea.vmem %s1335_s2, %s1122_s8 }
  0x28   : > { %s1176_s20 = sld [smem:[#allocation2 + $0x100]]  ;;  %v1225_v44 = vld [vmem:[%s491_s26] ss:$0 sm:$0xff] }
  0x29   : > { %s1180_s24 = sld [smem:[#allocation2 + $0x2]] }
  0x2a   : > { %v962_v0 = vld [vmem:[%s1343_s0 + $0x4] ss:$8 sps:$4 sm:$0xff]   ;;  %v960_v18 = vld [vmem:[%s1343_s0] ss:$8 sps:$4 sm:$0xff]   ;;  %v966_v20 = vld [vmem:[%s1343_s0 + $0x14] ss:$8 sps:$4 sm:$0xff]   ;;  %s1187_s28 = scalar_lea.vmem %s1343_s0, %s785_s11 }
  0x2b   : > { %v965_v1 = vld [vmem:[%s1343_s0 + $0x24] ss:$8 sps:$4 sm:$0xff]   ;;  %s1136_s22 = scalar_lea.vmem %s1344_s1, %s785_s11  ;;  %440 = vmatprep.mubr.bf16.mxu0 %v962_v0  ;;  %v963_v19 = vld [vmem:[%s1343_s0 + $0x20] ss:$8 sps:$4 sm:$0xff]   ;;  %v968_v21 = vld [vmem:[%s1343_s0 + $0x34] ss:$8 sps:$4 sm:$0xff]  }
  0x2c   : > { %v944_v2 = vld [vmem:[%s1136_s22 + $0xf0] ss:$8 sps:$4 sm:$0xff]   ;;  %456 = vmatprep.mubr.bf16.mxu1 %v965_v1  ;;  %v946_v4 = vld [vmem:[%s1136_s22 + $0xe0] ss:$8 sps:$4 sm:$0xff]   ;;  %s1189_s29 = sld [smem:[#allocation2 + $0x82]]  ;;  %v516_v37 = vstv %s1172_s13  ;;  %s215_s13 = sand.u32 1, %s1013_s15  }
  0x2d   : > { %v945_v3 = vld [vmem:[%s1136_s22 + $0x70] ss:$8 sps:$4 sm:$0xff]   ;;  %837 = vmatprep.subr.bf16.mxu0 %v944_v2  ;;  %877 = vmatprep.subr.bf16.mxu1 %v944_v2  ;;  %v947_v5 = vld [vmem:[%s1136_s22 + $0x60] ss:$8 sps:$4 sm:$0xff]   ;;  %s1191_s30 = sld [smem:[#allocation2 + $0x102]]  ;;  %v542_v38 = vstv %s1174_s14  ;;  %s783_s15 = sshll.u32 %s215_s13, 6 }
  0x2e   : > { %838 = vmatpush3.bf16.msra.mxu0 %v945_v3  ;;  %885 = vmatpush3.bf16.msra.mxu1 %v945_v3  ;;  %v948_v6 = vld [vmem:[%s1136_s22 + $0xd0] ss:$8 sps:$4 sm:$0xff]   ;;  %v950_v8 = vld [vmem:[%s1136_s22 + $0xc0] ss:$8 sps:$4 sm:$0xff]   ;;  %s1193_s5 = sld [smem:[#allocation2 + $0x182]]  ;;  %v569_v45 = vstv %s1176_s20  ;;  %s1286_s14 = scalar_lea.vmem [#allocation4], %s783_s15 }
  0x2f   : > { %839 = vmatprep.subr.bf16.mxu0 %v946_v4  ;;  %878 = vmatprep.subr.bf16.mxu1 %v946_v4  ;;  %v949_v7 = vld [vmem:[%s1136_s22 + $0x50] ss:$8 sps:$4 sm:$0xff]   ;;  %v951_v9 = vld [vmem:[%s1136_s22 + $0x40] ss:$8 sps:$4 sm:$0xff]   ;;  %s1196_s6 = sld [smem:[#allocation2 + $0x1]]  ;;  %v526_v50 = vstv %s1180_s24 }
  0x30   : > { %v952_v10 = vld [vmem:[%s1136_s22 + $0xb0] ss:$8 sps:$4 sm:$0xff]   ;;  %v954_v12 = vld [vmem:[%s1136_s22 + $0xa0] ss:$8 sps:$4 sm:$0xff]   ;;  %s1199_s7 = sld [smem:[#allocation2 + $0x81]] }
  0x31   : > { %v953_v11 = vld [vmem:[%s1136_s22 + $0x30] ss:$8 sps:$4 sm:$0xff]   ;;  %v955_v13 = vld [vmem:[%s1136_s22 + $0x20] ss:$8 sps:$4 sm:$0xff]   ;;  %s1201_s11 = sld [smem:[#allocation2 + $0x101]] }
  0x32   : > { %840 = vmatpush3.bf16.msra.mxu0 %v947_v5  ;;  %886 = vmatpush3.bf16.msra.mxu1 %v947_v5  ;;  %v956_v14 = vld [vmem:[%s1136_s22 + $0x90] ss:$8 sps:$4 sm:$0xff]   ;;  %v958_v16 = vld [vmem:[%s1136_s22 + $0x80] ss:$8 sps:$4 sm:$0xff]   ;;  %s1203_s9 = sld [smem:[#allocation2 + $0x181]]  ;;  %v552_v51 = vstv %s1189_s29 }
  0x33   : > { %841 = vmatprep.subr.bf16.mxu0 %v948_v6  ;;  %879 = vmatprep.subr.bf16.mxu1 %v948_v6  ;;  %v957_v15 = vld [vmem:[%s1136_s22 + $0x10] ss:$8 sps:$4 sm:$0xff]   ;;  %v959_v17 = vld [vmem:[%s1136_s22] ss:$8 sps:$4 sm:$0xff]   ;;  %s1178_s22 = sld [smem:[#allocation2 + $0x180]]  ;;  %v579_v55 = vstv %s1191_s30 }
  0x34   : > { %v970_v22 = vld [vmem:[%s1343_s0 + $0x10] ss:$8 sps:$4 sm:$0xff]   ;;  %v475_v24 = vld [vmem:[%s1187_s28] ss:$8 sps:$4 sm:$0xff]   ;;  %s1205_s10 = sld [smem:[#allocation2 + $0x3]]  ;;  %v606_v56 = vstv %s1193_s5 }
  0x35   : > { %v971_v23 = vld [vmem:[%s1343_s0 + $0x30] ss:$8 sps:$4 sm:$0xff]   ;;  %v479_v27 = vld [vmem:[%s1187_s28 + $0x20] ss:$8 sps:$4 sm:$0xff]   ;;  %v483_v29 = vunpack.c.l.bf16 %v475_v24  ;;  %s1211_s0 = sld [smem:[#allocation2 + $0x83]]  ;;  %v484_v40 = vunpack.c.h.bf16 %v475_v24  ;;  %v520_v61 = vstv %s1196_s6 }
  0x36   : > { %842 = vmatpush3.bf16.msra.mxu0 %v949_v7  ;;  %887 = vmatpush3.bf16.msra.mxu1 %v949_v7  ;;  %v487_v33 = vunpack.c.l.bf16 %v479_v27  ;;  %s1213_s1 = sld [smem:[#allocation2 + $0x103]]  ;;  %v1218_v42 = vld [vmem:[%s1187_s28 + $0x10] ss:$8 sps:$4 sm:$0xff]   ;;  %v488_v48 = vunpack.c.h.bf16 %v479_v27  ;;  %v546_v62 = vstv %s1199_s7 }
  0x37   : > { %843 = vmatprep.subr.bf16.mxu0 %v950_v8  ;;  %880 = vmatprep.subr.bf16.mxu1 %v950_v8  ;;  %v1221_v43 = vld [vmem:[%s1187_s28 + $0x30] ss:$8 sps:$4 sm:$0xff]   ;;  %s1223_s8 = sld [smem:[#allocation2 + $0x183]]  ;;  %v485_v57 = vunpack.c.l.bf16 %v1218_v42  ;;  %v486_v0 = vunpack.c.h.bf16 %v1218_v42  ;;  %v573_v6 = vstv %s1201_s11 }
  0x38   : > { %v489_v58 = vunpack.c.l.bf16 %v1221_v43  ;;  %v600_v7 = vstv %s1203_s9 }
  0x39   : > { %v596_v49 = vstv %s1178_s22 }
  0x3a   : > { %844 = vmatpush3.bf16.msra.mxu0 %v951_v9  ;;  %888 = vmatpush3.bf16.msra.mxu1 %v951_v9 }
  0x3b   : > { %845 = vmatprep.subr.bf16.mxu0 %v952_v10  ;;  %881 = vmatprep.subr.bf16.mxu1 %v952_v10  ;;  %v490_v10 = vunpack.c.h.bf16 %v1221_v43 }
  0x3e   : > { %846 = vmatpush3.bf16.msra.mxu0 %v953_v11  ;;  %889 = vmatpush3.bf16.msra.mxu1 %v953_v11 }
  0x3f   : > { %847 = vmatprep.subr.bf16.mxu0 %v954_v12  ;;  %882 = vmatprep.subr.bf16.mxu1 %v954_v12 }
  0x42   : > { %848 = vmatpush3.bf16.msra.mxu0 %v955_v13  ;;  %890 = vmatpush3.bf16.msra.mxu1 %v955_v13 }
  0x43   : > { %849 = vmatprep.subr.bf16.mxu0 %v956_v14  ;;  %883 = vmatprep.subr.bf16.mxu1 %v956_v14  ;;  %v532_v14 = vstv %s1205_s10 }
  0x46   : > { %850 = vmatpush3.bf16.msra.mxu0 %v957_v15  ;;  %891 = vmatpush3.bf16.msra.mxu1 %v957_v15 }
  0x47   : > { %851 = vmatprep.subr.bf16.mxu0 %v958_v16  ;;  %884 = vmatprep.subr.bf16.mxu1 %v958_v16  ;;  %v558_v16 = vstv %s1211_s0  ;;  %s834_s0 = sshll.u32 (%p1089_p3), %s1021_s17, 3 }
  0x48   : > { %s633_s22 = scalar_lea.vmem (%p1089_p3), %s1337_s4, %s834_s0 }
  0x4a   : > { %852 = vmatpush3.bf16.msra.mxu0 %v959_v17  ;;  %892 = vmatpush3.bf16.msra.mxu1 %v959_v17  ;;  %v585_v17 = vstv %s1213_s1 }
  0x4d   : > { %441 = vmatmul.mubr.bf16.vlgmr.msra.gmra.mxu0 %v960_v18  ;;  %457 = vmatmul.mubr.bf16.vlgmr.msra.gmra.mxu1 %v963_v19  ;;  %v612_v18 = vstv %s1223_s8 }
  0x4e   : > { %448 = vmatprep.mubr.bf16.mxu0 %v966_v20  ;;  %464 = vmatprep.mubr.bf16.mxu1 %v968_v21 }
  0x55   : > { %449 = vmatmul.mubr.bf16.gmra.mxu0 %v970_v22  ;;  %465 = vmatmul.mubr.bf16.gmra.mxu1 %v971_v23 }
 0x10d   : > { %v853_v25 = vpop.f32.mrf.mxu0  ;;  %v865_v26 = vpop.f32.mrf.mxu1 }
 0x10f   : > { %v854_v28 = vpop.f32.mrf.mxu0  ;;  %v866_v30 = vpop.f32.mrf.mxu1 }
 0x110   : > { %v855_v31 = vadd.f32 %v854_v28, %v853_v25  ;;  %v867_v32 = vadd.f32 %v866_v30, %v865_v26 }
 0x111   : > { %v856_v34 = vpop.f32.mrf.mxu0  ;;  %v868_v35 = vpop.f32.mrf.mxu1 }
 0x112   : > { %v493_v36 = vsub.f32 %v855_v31, %v483_v29  ;;  %v497_v46 = vsub.f32 %v867_v32, %v487_v33 }
 0x113   : > { %v857_v39 = vpop.f32.mrf.mxu0  ;;  %v869_v41 = vpop.f32.mrf.mxu1 }
 0x114   : > { %v858_v47 = vadd.f32 %v857_v39, %v856_v34  ;;  %v870_v52 = vadd.f32 %v869_v41, %v868_v35  ;;  %v507_v59 = vadd.f32 %v1225_v44, %v493_v36  ;;  %v511_v1 = vadd.f32 %v1225_v44, %v497_v46 }
 0x115   : > { %v859_v53 = vpop.f32.mrf.mxu0  ;;  %v871_v54 = vpop.f32.mrf.mxu1 }
 0x116   : > { %v494_v2 = vsub.f32 %v858_v47, %v484_v40  ;;  %v498_v5 = vsub.f32 %v870_v52, %v488_v48  ;;  %v517_v15 = vmul.f32 %v516_v37, %v507_v59  ;;  %v543_v19 = vmul.f32 %v542_v38, %v507_v59 }
 0x117   : > { %v860_v60 = vpop.f32.mrf.mxu0  ;;  %v872_v63 = vpop.f32.mrf.mxu1  ;;  %v570_v20 = vmul.f32 %v569_v45, %v507_v59  ;;  %v597_v21 = vmul.f32 %v596_v49, %v507_v59  ;;  %v527_v22 = vmul.f32 %v526_v50, %v511_v1  ;;  %v553_v25 = vmul.f32 %v552_v51, %v511_v1 }
 0x118   : > { %v861_v3 = vadd.f32 %v860_v60, %v859_v53  ;;  %v873_v4 = vadd.f32 %v872_v63, %v871_v54  ;;  %v508_v11 = vadd.f32 %v1225_v44, %v494_v2  ;;  %v580_v26 = vmul.f32 %v579_v55, %v511_v1 }
 0x119   : > { %v862_v8 = vpop.f32.mrf.mxu0  ;;  %v874_v9 = vpop.f32.mrf.mxu1  ;;  %v607_v27 = vmul.f32 %v606_v56, %v511_v1  ;;  %v512_v28 = vadd.f32 %v1225_v44, %v498_v5 }
 0x11a   : > { %v495_v12 = vsub.f32 %v861_v3, %v485_v57  ;;  %v499_v13 = vsub.f32 %v873_v4, %v489_v58  ;;  %v518_v29 = vmul.f32 %v516_v37, %v508_v11  ;;  %v544_v30 = vmul.f32 %v542_v38, %v508_v11 }
 0x11b   : > { %v863_v23 = vpop.f32.mrf.mxu0  ;;  %v875_v24 = vpop.f32.mrf.mxu1  ;;  %v571_v33 = vmul.f32 %v569_v45, %v508_v11  ;;  %v598_v34 = vmul.f32 %v596_v49, %v508_v11  ;;  %v528_v42 = vmul.f32 %v526_v50, %v512_v28  ;;  %v554_v38 = vmul.f32 %v552_v51, %v512_v28 }
 0x11c   : > { %v509_v31 = vadd.f32 %v1225_v44, %v495_v12  ;;  %v513_v32 = vadd.f32 %v1225_v44, %v499_v13  ;;  %v864_v35 = vadd.f32 %v863_v23, %v862_v8  ;;  %v876_v36 = vadd.f32 %v875_v24, %v874_v9 }
 0x11d   : > { %v581_v60 = vmul.f32 %v579_v55, %v512_v28  ;;  %v608_v63 = vmul.f32 %v606_v56, %v512_v28 }
 0x11e   : > { %v521_v39 = vmul.f32 %v520_v61, %v509_v31  ;;  %v547_v40 = vmul.f32 %v546_v62, %v509_v31  ;;  %v574_v41 = vmul.f32 %v573_v6, %v509_v31  ;;  %v601_v37 = vmul.f32 %v600_v7, %v509_v31 }
 0x11f   : > { %v533_v43 = vmul.f32 %v532_v14, %v513_v32  ;;  %v559_v45 = vmul.f32 %v558_v16, %v513_v32  ;;  %v586_v52 = vmul.f32 %v585_v17, %v513_v32  ;;  %v613_v53 = vmul.f32 %v612_v18, %v513_v32 }
 0x120   : > { %v523_v46 = vadd.f32 %v521_v39, %v517_v15  ;;  %v549_v47 = vadd.f32 %v547_v40, %v543_v19  ;;  %v576_v48 = vadd.f32 %v574_v41, %v570_v20  ;;  %v603_v49 = vadd.f32 %v601_v37, %v597_v21 }
 0x121   : > { %v496_v54 = vsub.f32 %v864_v35, %v486_v0  ;;  %v500_v50 = vsub.f32 %v876_v36, %v490_v10 }
 0x122   : > { %v529_v51 = vadd.f32 %v527_v22, %v523_v46  ;;  %v555_v57 = vadd.f32 %v553_v25, %v549_v47  ;;  %v582_v58 = vadd.f32 %v580_v26, %v576_v48  ;;  %v609_v59 = vadd.f32 %v607_v27, %v603_v49 }
 0x123   : > { %v510_v1 = vadd.f32 %v1225_v44, %v496_v54  ;;  %v514_v2 = vadd.f32 %v1225_v44, %v500_v50 }
 0x124   : > { %v535_v3 = vadd.f32 %v533_v43, %v529_v51  ;;  %v561_v4 = vadd.f32 %v559_v45, %v555_v57  ;;  %v588_v0 = vadd.f32 %v586_v52, %v582_v58  ;;  %v615_v5 = vadd.f32 %v613_v53, %v609_v59 }
 0x125   : > { %v522_v8 = vmul.f32 %v520_v61, %v510_v1  ;;  %v548_v9 = vmul.f32 %v546_v62, %v510_v1  ;;  %v575_v10 = vmul.f32 %v573_v6, %v510_v1  ;;  %v602_v55 = vmul.f32 %v600_v7, %v510_v1 }
 0x126   : > { %v537_v56 = vmax.f32 %v535_v3, 0.0  ;;  %v563_v11 = vmax.f32 %v561_v4, 0.0  ;;  %v590_v12 = vmax.f32 %v588_v0, 0.0  ;;  %v617_v44 = vmax.f32 %v615_v5, 0.0 }
 0x127   : > { %v524_v13 = vadd.f32 %v522_v8, %v518_v29  ;;  %v550_v15 = vadd.f32 %v548_v9, %v544_v30  ;;  %v577_v19 = vadd.f32 %v575_v10, %v571_v33  ;;  %v604_v20 = vadd.f32 %v602_v55, %v598_v34 }
 0x128   : > { %539 = vst [vmem:[%s1286_s14] sm:$0xff] %v537_v56  ;;  %819 = vst [vmem:[%s1286_s14 + $0x10] sm:$0xff] %v563_v11  ;;  %v534_v61 = vmul.f32 %v532_v14, %v514_v2  ;;  %v560_v62 = vmul.f32 %v558_v16, %v514_v2  ;;  %v587_v6 = vmul.f32 %v585_v17, %v514_v2 }
 0x129   : > { %825 = vst [vmem:[%s1286_s14 + $0x20] sm:$0xff] %v590_v12  ;;  %831 = vst [vmem:[%s1286_s14 + $0x30] sm:$0xff] %v617_v44  ;;  %v614_v7 = vmul.f32 %v612_v18, %v514_v2  ;;  %v530_v21 = vadd.f32 %v528_v42, %v524_v13  ;;  %v556_v22 = vadd.f32 %v554_v38, %v550_v15 }
 0x12a   : > { %v583_v23 = vadd.f32 %v581_v60, %v577_v19  ;;  %v610_v24 = vadd.f32 %v608_v63, %v604_v20 }
 0x12b   : > { %v536_v25 = vadd.f32 %v534_v61, %v530_v21  ;;  %v562_v26 = vadd.f32 %v560_v62, %v556_v22 }
 0x12c   : > { %v589_v27 = vadd.f32 %v587_v6, %v583_v23  ;;  %v616_v28 = vadd.f32 %v614_v7, %v610_v24  ;;  %628 = sbr.rel (!%p1089_p3) target bundleno = 313 (0x139), region = 44 }
 0x12d   : > { %v538_v29 = vmax.f32 %v536_v25, 0.0  ;;  %v564_v14 = vmax.f32 %v562_v26, 0.0 }
 0x12e   : > { %v591_v30 = vmax.f32 %v589_v27, 0.0  ;;  %v618_v31 = vmax.f32 %v616_v28, 0.0 }
 0x12f   : > { %540 = vst [vmem:[%s1286_s14 + $0x8] sm:$0xff] %v538_v29  ;;  %820 = vst [vmem:[%s1286_s14 + $0x18] sm:$0xff] %v564_v14  ;;  %v676_v16 = vld [vmem:[%s1286_s14] sm:$0xff] (%p1089_p3)  ;;  %v680_v18 = vld [vmem:[%s1286_s14 + $0x10] sm:$0xff] (%p1089_p3) }
 0x130   : > { %826 = vst [vmem:[%s1286_s14 + $0x28] sm:$0xff] %v591_v30  ;;  %832 = vst [vmem:[%s1286_s14 + $0x38] sm:$0xff] %v618_v31  ;;  %v684_v33 = vld [vmem:[%s1286_s14 + $0x20] sm:$0xff] (%p1089_p3)  ;;  %v688_v35 = vld [vmem:[%s1286_s14 + $0x30] sm:$0xff] (%p1089_p3) }
 0x131   : > { %677 = vst [vmem:[%s633_s22] sm:$0xff] %v676_v16  ;;  %681 = vst [vmem:[%s633_s22 + $0x20] sm:$0xff] %v680_v18 }
 0x132   : > { %685 = vst [vmem:[%s633_s22 + $0x40] sm:$0xff] %v684_v33  ;;  %689 = vst [vmem:[%s633_s22 + $0x60] sm:$0xff] %v688_v35 }
 0x136   : > { %v678_v17 = vld [vmem:[%s1286_s14 + $0x8] sm:$0xff]  ;;  %v682_v32 = vld [vmem:[%s1286_s14 + $0x18] sm:$0xff] }
 0x137   : > { %v686_v34 = vld [vmem:[%s1286_s14 + $0x28] sm:$0xff]  ;;  %679 = vst [vmem:[%s633_s22 + $0x10] sm:$0xff] %v678_v17  ;;  %683 = vst [vmem:[%s633_s22 + $0x30] sm:$0xff] %v682_v32  ;;  %v690_v36 = vld [vmem:[%s1286_s14 + $0x38] sm:$0xff] }
 0x138   : > { %687 = vst [vmem:[%s633_s22 + $0x50] sm:$0xff] %v686_v34  ;;  %691 = vst [vmem:[%s633_s22 + $0x70] sm:$0xff] %v690_v36 }
 0x139 PF: > { %s15_s19 = sadd.s32 1, %s1029_s19   ;;  %s1345_s15 = smov %s1017_s16 }
 0x13a   : > { %p12_p3 = scmp.ge.s32.totalorder %s15_s19, 4   ;;  %s1346_s16 = smov %s1106_s27 }
 0x13b   : > { %s1347_s17 = smov %s1025_s18  ;;  %s1348_s18 = smov %s1350_s21 }
 0x13c   :  { %14 = sbr.rel (!%p12_p3) target bundleno = 6 (0x6), region = 115 }
 0x141   :  { %707 = vsyncpa [#allocation3], 1 }
 0x142   :  { %709 = vsyncpa [#allocation3 + $0x1], 1 }

</bundles_post_ra>
